<compile_context>
chip_gen: v7x
topology: tpu7x:2x2x1
jax: 0.10.0
libtpu: 0.0.40
codegen_flags: <defaults>
</compile_context>

<pallas_src>
import functools

import jax
import jax.numpy as jnp
from jax.experimental import pallas as pl
from jax.experimental.pallas import tpu as pltpu

EPS = 1e-6  # nn.CosineSimilarity eps


def _round_up(x, m):
    return ((x + m - 1) // m) * m


# ---------------------------------------------------------------------------
# Pallas kernel: scores a block of `tm` mentions against all C candidates.
# ---------------------------------------------------------------------------
def el_score_kernel(scal_ref,            # SMEM (2,): [w_cos, b_score]
                    row_ref,             # (tm, D+2Ds) bf16: [mention | sentence | summary]
                    c_ref,               # (C, tm, D) bf16, candidate-major
                    wm_ref, wc_ref,      # (D, Dm) bf16 halves of mlp_embed weight
                    be_ref,              # (1, Dm) f32 mlp_embed bias
                    wsd_ref, wss_ref,    # (1, D) f32 score weights (feature_dot / feature_sub)
                    wrow_ref,            # (1, D+2Ds) f32 = [w_sub | w_sent | w_summ]
                    wmlp_ref,            # (1, Dm) f32
                    out_ref):            # (C, tm) f32, candidate-major (lane-dense store)
    C, tm, D = c_ref.shape
    Dm = wm_ref.shape[1]

    w_cos = scal_ref[0]
    b_score = scal_ref[1]

    rows_bf = row_ref[...]                                   # (tm, F) bf16
    rows_f = rows_bf.astype(jnp.float32)
    m_bf = rows_bf[:, :D]                                    # (tm, D) bf16 (MXU operand)
    m_f = rows_f[:, :D]                                      # (tm, D) f32  (VPU path)

    c_bf = c_ref[...]                                        # (C, tm, D) bf16
    c_f = c_bf.astype(jnp.float32)

    # ---- per-mention work, shared across all C candidates -----------------
    m3 = m_f[None]                                           # (1, tm, D)
    nm = jnp.sqrt(jnp.sum(m3 * m3, axis=-1))                 # (1, tm)
    # m.w_sub + sent.w_sent + summ.w_summ + bias in one fused reduce
    s_shared = jnp.sum(rows_f[None] * wrow_ref[...], axis=-1) + b_score   # (1, tm)
    mwsd = m_f * wsd_ref[...]                                # (tm, D), hoisted out of cand. math
    h_m = jnp.dot(m_bf, wm_ref[...],
                  preferred_element_type=jnp.float32) + be_ref[...]        # (tm, Dm)

    # ---- all candidates at once: one batched bf16 MXU matmul --------------
    # Leading-dim collapse (C, tm, D) -> (C*tm, D). For bf16 this is layout-free
    # when tm is a multiple of the bf16 sublane packing (16); otherwise go
    # through the sublane-aligned f32 copy (tm is always a multiple of 8).
    if tm % 16 == 0:
        c_mxu = c_bf.reshape(C * tm, D)
    else:
        c_mxu = c_f.reshape(C * tm, D).astype(jnp.bfloat16)
    h_c = jnp.dot(c_mxu, wc_ref[...],
                  preferred_element_type=jnp.float32).reshape(C, tm, Dm)
    h = jnp.maximum(h_c + h_m[None], 0.0)                    # (C, tm, Dm)
    term_mlp = jnp.sum(h * wmlp_ref[...], axis=-1)           # (C, tm)

    dot_mc = jnp.sum(c_f * m3, axis=-1)                      # (C, tm)
    nc = jnp.sqrt(jnp.sum(c_f * c_f, axis=-1))               # (C, tm)
    denom = jnp.maximum(nm * nc, EPS)
    cos = dot_mc * pl.reciprocal(denom, approx=True)         # EUP reciprocal

    term_dot = jnp.sum(c_f * mwsd[None], axis=-1)            # (m*c) . w_dot
    term_sub = jnp.sum(c_f * wss_ref[...], axis=-1)          # c-half of (m-c) . w_sub

    out_ref[...] = term_dot - term_sub + term_mlp + cos * w_cos + s_shared


def el_score_pallas(scal, rows, c_cm, wm, wc, be, wsd, wss, wrow, wmlp, *, tm):
    """rows: (NM_pad, D+2Ds) bf16 per-mention slab; c_cm: (C, NM_pad, D) bf16."""
    NM_pad, F = rows.shape
    C, _, D = c_cm.shape
    Dm = wm.shape[1]
    assert NM_pad % tm == 0
    grid = (NM_pad // tm,)

    full = lambda shp: pl.BlockSpec(shp, lambda i, _n=len(shp): (0,) * _n)

    # Explicit VMEM budget (double-buffered streaming blocks + intermediates),
    # so the pipeline keeps its depth instead of hitting the default scoped cap.
    est = (2 * C * tm * D * 2          # candidate block, bf16, double-buffered
           + 2 * tm * F * 2            # fused row slab
           + 2 * C * tm * 4            # output block
           + 2 * (2 * D * Dm * 2 + (2 * D + F + 2 * Dm) * 4)   # weights
           + C * tm * D * 4            # f32 candidate copy
           + 2 * C * tm * Dm * 4       # mlp hidden
           + 8 * C * tm * 4)           # (C, tm) temporaries
    vmem_limit = int(min(max(2 * est, 32 << 20), 64 << 20))

    return pl.pallas_call(
        el_score_kernel,
        out_shape=jax.ShapeDtypeStruct((C, NM_pad), jnp.float32),
        grid_spec=pltpu.PrefetchScalarGridSpec(
            num_scalar_prefetch=0,
            grid=grid,
            in_specs=[
                pl.BlockSpec(memory_space=pltpu.MemorySpace.SMEM),  # [w_cos, b_score]
                pl.BlockSpec((tm, F), lambda i: (i, 0)),            # fused mention rows
                pl.BlockSpec((C, tm, D), lambda i: (0, i, 0)),      # candidates (C-major)
                full((D, Dm)),                                      # Wm (mlp_embed, mention half)
                full((D, Dm)),                                      # Wc (mlp_embed, candidate half)
                full((1, Dm)),                                      # b_embed
                full((1, D)),                                       # w_score: feature_dot
                full((1, D)),                                       # w_score: feature_sub
                full((1, F)),                                       # w_score: [sub|sent|summ] fused
                full((1, Dm)),                                      # w_score: mlp_embed output
            ],
            out_specs=pl.BlockSpec((C, tm), lambda i: (0, i)),
        ),
        compiler_params=pltpu.CompilerParams(
            dimension_semantics=("parallel",),
            vmem_limit_bytes=vmem_limit),
    )(scal, rows, c_cm, wm, wc, be, wsd, wss, wrow, wmlp)


# ---------------------------------------------------------------------------
# Synthetic submodules (plain-JAX glue)
# TODO(synk): encoder/cnn_embed are injected nn.Modules in the original code;
#             implemented here as deterministic embedding + mean-pool + linear.
# ---------------------------------------------------------------------------
def encoder_fwd(params, index_sentence):
    emb = params["enc_table"][index_sentence]          # (rows, L, Ds)
    return jnp.mean(emb, axis=1)                       # (rows, Ds)


def cnn_embed_fwd(params, index_char, index_word):
    ce = jnp.mean(params["char_table"][index_char], axis=1)   # (rows, D)
    we = jnp.mean(params["word_table"][index_word], axis=1)   # (rows, D)
    out = ce @ params["cnn_w_char"] + we @ params["cnn_w_word"] + params["cnn_b"]
    return jax.nn.relu(out)                                   # (rows, D)


# ---------------------------------------------------------------------------
# Full Entity_Linking_CNN forward
# ---------------------------------------------------------------------------
def entity_linking_cnn_forward(params, index_candidates, index_mentions,
                               index_sentence, index_summary,
                               index_mentions_word, index_candidates_word,
                               *, num_mention, num_candidate,
                               block_mentions=256):
    B = index_sentence.shape[0]
    M, C = num_mention, num_candidate
    NM = B * M

    # Candidate-major ordering is applied to the cheap integer index rows, so
    # the big float activation comes out of cnn_embed already in kernel layout.
    perm = jnp.arange(NM * C).reshape(NM, C).T.reshape(-1)
    feat_c = cnn_embed_fwd(params, index_candidates[perm],
                           index_candidates_word[perm])                     # (C*NM, D)
    feat_m = cnn_embed_fwd(params, index_mentions, index_mentions_word)     # (NM,   D)
    feat_sent = encoder_fwd(params, index_sentence)                         # (B, Ds)
    feat_summ = encoder_fwd(params, index_summary)                          # (B, Ds)

    D = feat_m.shape[-1]
    Ds = feat_sent.shape[-1]
    row_dtype = jnp.bfloat16

    c_cm = feat_c.reshape(C, NM, D).astype(row_dtype)                       # (C, NM, D)
    # One fused per-mention row slab: [mention | sentence | summary]
    rows = jnp.concatenate([feat_m,
                            jnp.repeat(feat_sent, M, axis=0),
                            jnp.repeat(feat_summ, M, axis=0)],
                           axis=1).astype(row_dtype)                        # (NM, D+2Ds)

    # split mlp_embed / mlp_score weights along the torch.cat feature order
    W_e, b_e = params["mlp_embed_w"], params["mlp_embed_b"]     # (2D, Dm), (Dm,)
    Dm = W_e.shape[1]
    wm = W_e[:D].astype(row_dtype)                              # bf16 MXU operands
    wc = W_e[D:].astype(row_dtype)
    W_s, b_s = params["mlp_score_w"], params["mlp_score_b"]     # (Ftot, 1), (1,)
    o = 0
    wsd = W_s[o:o + D, 0][None, :]; o += D          # feature_dot
    wss = W_s[o:o + D, 0][None, :]; o += D          # feature_sub
    wsent = W_s[o:o + Ds, 0][None, :]; o += Ds      # sentence
    wmlp = W_s[o:o + Dm, 0][None, :]; o += Dm       # mlp_embed output
    wsumm = W_s[o:o + Ds, 0][None, :]; o += Ds      # summary
    w_cos = W_s[o, 0]                               # cosine score
    wrow = jnp.concatenate([wss, wsent, wsumm], axis=1)         # (1, D+2Ds)
    scal = jnp.stack([w_cos, b_s[0]]).astype(jnp.float32)       # (2,) -> SMEM

    # Tile size: lane-dense (multiple of 128) whenever the mention axis is
    # tiled, full extent otherwise; prefer >= 2 grid steps (v7x has 2 TCs).
    NM8 = _round_up(NM, 8)
    if NM8 >= 2 * 128:
        tm = min(_round_up(block_mentions, 128),
                 max(128, (NM8 // 2) // 128 * 128))
    else:
        tm = NM8
    NM_pad = _round_up(NM, tm)
    if NM_pad != NM:
        pad = NM_pad - NM
        rows = jnp.pad(rows, ((0, pad), (0, 0)))
        c_cm = jnp.pad(c_cm, ((0, 0), (0, pad), (0, 0)))

    scores_cm = el_score_pallas(scal, rows, c_cm, wm, wc, b_e[None, :],
                                wsd, wss, wrow, wmlp, tm=tm)    # (C, NM_pad)

    return scores_cm[:, :NM].T.reshape(B, M, C)   # (batch, num_mention, num_candidate*out_dim)


# ---------------------------------------------------------------------------
# Pure-JAX reference (mirrors the PyTorch math 1:1, f32) for a sanity check
# ---------------------------------------------------------------------------
def reference_forward(params, *args, num_mention, num_candidate):
    (index_candidates, index_mentions, index_sentence, index_summary,
     index_mentions_word, index_candidates_word) = args
    B = index_sentence.shape[0]
    M, C = num_mention, num_candidate

    feat_c = cnn_embed_fwd(params, index_candidates, index_candidates_word)
    feat_m = cnn_embed_fwd(params, index_mentions, index_mentions_word)
    feat_sent = encoder_fwd(params, index_sentence)
    feat_summ = encoder_fwd(params, index_summary)

    D = feat_c.shape[-1]
    feat_c = feat_c.reshape(B, M, C, D)
    feat_m = jnp.broadcast_to(feat_m.reshape(B, M, 1, D), (B, M, C, D))

    dot_mc = jnp.sum(feat_m * feat_c, axis=-1, keepdims=True)
    nm = jnp.linalg.norm(feat_m, axis=-1, keepdims=True)
    nc = jnp.linalg.norm(feat_c, axis=-1, keepdims=True)
    cos = dot_mc / jnp.maximum(nm * nc, EPS)

    mlp_in = jnp.concatenate([feat_m, feat_c], axis=-1)
    h = jax.nn.relu(mlp_in @ params["mlp_embed_w"] + params["mlp_embed_b"])

    sent = jnp.broadcast_to(feat_sent[:, None, None, :], (B, M, C, feat_sent.shape[-1]))
    summ = jnp.broadcast_to(feat_summ[:, None, None, :], (B, M, C, feat_summ.shape[-1]))
    feats = jnp.concatenate([feat_m * feat_c, feat_m - feat_c, sent, h, summ, cos], axis=-1)
    score = feats @ params["mlp_score_w"] + params["mlp_score_b"]
    return score.reshape(B, M, -1)


# ---------------------------------------------------------------------------
def make_params(key, *, vocab, D, Ds, Dm):
    ks = jax.random.split(key, 9)
    s = 0.1
    Ftot = D + D + Ds + Dm + Ds + 1
    return {
        "char_table": s * jax.random.normal(ks[0], (vocab, D), jnp.float32),
        "word_table": s * jax.random.normal(ks[1], (vocab, D), jnp.float32),
        "cnn_w_char": s * jax.random.normal(ks[2], (D, D), jnp.float32),
        "cnn_w_word": s * jax.random.normal(ks[3], (D, D), jnp.float32),
        "cnn_b": s * jax.random.normal(ks[4], (D,), jnp.float32),
        "enc_table": s * jax.random.normal(ks[5], (vocab, Ds), jnp.float32),
        "mlp_embed_w": s * jax.random.normal(ks[6], (2 * D, Dm), jnp.float32),
        "mlp_embed_b": s * jax.random.normal(ks[7], (Dm,), jnp.float32),
        "mlp_score_w": s * jax.random.normal(ks[8], (Ftot, 1), jnp.float32),
        "mlp_score_b": jnp.zeros((1,), jnp.float32),
    }


if __name__ == "__main__":
    B, M, C = 2, 4, 4
    L_char, L_word, L_sent = 8, 4, 8
    vocab, D, Ds, Dm = 50, 32, 32, 32

    key = jax.random.PRNGKey(0)
    kp, k1, k2, k3, k4, k5, k6 = jax.random.split(key, 7)
    params = make_params(kp, vocab=vocab, D=D, Ds=Ds, Dm=Dm)

    index_candidates = jax.random.randint(k1, (B * M * C, L_char), 0, vocab)
    index_candidates_word = jax.random.randint(k2, (B * M * C, L_word), 0, vocab)
    index_mentions = jax.random.randint(k3, (B * M, L_char), 0, vocab)
    index_mentions_word = jax.random.randint(k4, (B * M, L_word), 0, vocab)
    index_sentence = jax.random.randint(k5, (B, L_sent), 0, vocab)
    index_summary = jax.random.randint(k6, (B, L_sent), 0, vocab)

    fwd = functools.partial(entity_linking_cnn_forward,
                            num_mention=M, num_candidate=C)
    out = fwd(params, index_candidates, index_mentions, index_sentence,
              index_summary, index_mentions_word, index_candidates_word)
    out = jax.block_until_ready(out)

    ref = reference_forward(params, index_candidates, index_mentions,
                            index_sentence, index_summary,
                            index_mentions_word, index_candidates_word,
                            num_mention=M, num_candidate=C)
    ref = jax.block_until_ready(ref)

    assert out.shape == (B, M, C), out.shape
    # kernel streams bf16 features / bf16 MXU weights (perf); compare vs f32 ref
    assert jnp.allclose(out, ref, rtol=1e-2, atol=1e-2), (
        f"max abs diff {jnp.max(jnp.abs(out - ref))}")
    print("KERNEL_OK")
</pallas_src>

<mosaic_0001>
module attributes {stable_mosaic.version = 11 : i64} {
  func.func @el_score_kernel(%arg0: i32, %arg1: memref<2xf32, #tpu.memory_space<smem>>, %arg2: memref<8x96xbf16, #tpu.memory_space<vmem>>, %arg3: memref<4x8x32xbf16, #tpu.memory_space<vmem>>, %arg4: memref<32x32xbf16, #tpu.memory_space<vmem>>, %arg5: memref<32x32xbf16, #tpu.memory_space<vmem>>, %arg6: memref<1x32xf32, #tpu.memory_space<vmem>>, %arg7: memref<1x32xf32, #tpu.memory_space<vmem>>, %arg8: memref<1x32xf32, #tpu.memory_space<vmem>>, %arg9: memref<1x96xf32, #tpu.memory_space<vmem>>, %arg10: memref<1x32xf32, #tpu.memory_space<vmem>>, %arg11: memref<4x8xf32, #tpu.memory_space<vmem>>) attributes {dimension_semantics = [#tpu.dimension_semantics<parallel>], iteration_bounds = array<i64: 1>, scalar_prefetch = 0 : i64, scratch_operands = 0 : i64, tpu.core_type = #tpu.core_type<tc>, window_params = [{transform_indices = @transform_0, window_bounds = array<i64: 2>}, {transform_indices = @transform_1, window_bounds = array<i64: 8, 96>}, {transform_indices = @transform_2, window_bounds = array<i64: 4, 8, 32>}, {pipeline_mode = #tpu.pipeline_mode<synchronous>, transform_indices = @transform_3, window_bounds = array<i64: 32, 32>}, {pipeline_mode = #tpu.pipeline_mode<synchronous>, transform_indices = @transform_4, window_bounds = array<i64: 32, 32>}, {pipeline_mode = #tpu.pipeline_mode<synchronous>, transform_indices = @transform_5, window_bounds = array<i64: 1, 32>}, {pipeline_mode = #tpu.pipeline_mode<synchronous>, transform_indices = @transform_6, window_bounds = array<i64: 1, 32>}, {pipeline_mode = #tpu.pipeline_mode<synchronous>, transform_indices = @transform_7, window_bounds = array<i64: 1, 32>}, {pipeline_mode = #tpu.pipeline_mode<synchronous>, transform_indices = @transform_8, window_bounds = array<i64: 1, 96>}, {pipeline_mode = #tpu.pipeline_mode<synchronous>, transform_indices = @transform_9, window_bounds = array<i64: 1, 32>}, {transform_indices = @transform_10, window_bounds = array<i64: 4, 8>}]} {
    %c0 = arith.constant 0 : index
    %0 = memref.load %arg1[%c0] : memref<2xf32, #tpu.memory_space<smem>>
    %c1 = arith.constant 1 : index
    %1 = memref.load %arg1[%c1] : memref<2xf32, #tpu.memory_space<smem>>
    %c0_0 = arith.constant 0 : index
    %c0_1 = arith.constant 0 : index
    %2 = vector.load %arg2[%c0_0, %c0_1] : memref<8x96xbf16, #tpu.memory_space<vmem>>, vector<8x96xbf16>
    %3 = arith.extf %2 : vector<8x96xbf16> to vector<8x96xf32>
    %4 = vector.extract_strided_slice %2 {offsets = [0, 0], sizes = [8, 32], strides = [1, 1]} : vector<8x96xbf16> to vector<8x32xbf16>
    %5 = vector.extract_strided_slice %3 {offsets = [0, 0], sizes = [8, 32], strides = [1, 1]} : vector<8x96xf32> to vector<8x32xf32>
    %c0_2 = arith.constant 0 : index
    %c0_3 = arith.constant 0 : index
    %c0_4 = arith.constant 0 : index
    %6 = vector.load %arg3[%c0_2, %c0_3, %c0_4] : memref<4x8x32xbf16, #tpu.memory_space<vmem>>, vector<4x8x32xbf16>
    %7 = arith.extf %6 : vector<4x8x32xbf16> to vector<4x8x32xf32>
    %8 = vector.shape_cast %5 : vector<8x32xf32> to vector<1x8x32xf32>
    %9 = arith.mulf %8, %8 : vector<1x8x32xf32>
    %cst = arith.constant dense<0.000000e+00> : vector<1x8xf32>
    %10 = vector.multi_reduction <add>, %9, %cst [2] : vector<1x8x32xf32> to vector<1x8xf32>
    %11 = math.sqrt %10 : vector<1x8xf32>
    %12 = vector.shape_cast %3 : vector<8x96xf32> to vector<1x8x96xf32>
    %c0_5 = arith.constant 0 : index
    %c0_6 = arith.constant 0 : index
    %13 = vector.load %arg9[%c0_5, %c0_6] : memref<1x96xf32, #tpu.memory_space<vmem>>, vector<1x96xf32>
    %14 = vector.shape_cast %13 : vector<1x96xf32> to vector<1x1x96xf32>
    %15 = vector.broadcast %14 : vector<1x1x96xf32> to vector<1x8x96xf32>
    %16 = arith.mulf %12, %15 : vector<1x8x96xf32>
    %cst_7 = arith.constant dense<0.000000e+00> : vector<1x8xf32>
    %17 = vector.multi_reduction <add>, %16, %cst_7 [2] : vector<1x8x96xf32> to vector<1x8xf32>
    %18 = vector.broadcast %1 : f32 to vector<1x8xf32>
    %19 = arith.addf %17, %18 : vector<1x8xf32>
    %c0_8 = arith.constant 0 : index
    %c0_9 = arith.constant 0 : index
    %20 = vector.load %arg7[%c0_8, %c0_9] : memref<1x32xf32, #tpu.memory_space<vmem>>, vector<1x32xf32>
    %21 = vector.broadcast %20 : vector<1x32xf32> to vector<8x32xf32>
    %22 = arith.mulf %5, %21 : vector<8x32xf32>
    %c0_10 = arith.constant 0 : index
    %c0_11 = arith.constant 0 : index
    %23 = vector.load %arg4[%c0_10, %c0_11] : memref<32x32xbf16, #tpu.memory_space<vmem>>, vector<32x32xbf16>
    %cst_12 = arith.constant dense<0.000000e+00> : vector<8x32xf32>
    %24 = tpu.matmul %4, %23, %cst_12 {dimension_numbers = #tpu.dot_dimension_numbers<[1], [0], [0], [1], [0, 0, 1, 1], [], []>} : vector<8x32xbf16>, vector<32x32xbf16>, vector<8x32xf32> -> vector<8x32xf32>
    %c0_13 = arith.constant 0 : index
    %c0_14 = arith.constant 0 : index
    %25 = vector.load %arg6[%c0_13, %c0_14] : memref<1x32xf32, #tpu.memory_space<vmem>>, vector<1x32xf32>
    %26 = vector.broadcast %25 : vector<1x32xf32> to vector<8x32xf32>
    %27 = arith.addf %24, %26 : vector<8x32xf32>
    %28 = vector.shape_cast %7 : vector<4x8x32xf32> to vector<32x32xf32>
    %29 = arith.truncf %28 : vector<32x32xf32> to vector<32x32xbf16>
    %c0_15 = arith.constant 0 : index
    %c0_16 = arith.constant 0 : index
    %30 = vector.load %arg5[%c0_15, %c0_16] : memref<32x32xbf16, #tpu.memory_space<vmem>>, vector<32x32xbf16>
    %cst_17 = arith.constant dense<0.000000e+00> : vector<32x32xf32>
    %31 = tpu.matmul %29, %30, %cst_17 {dimension_numbers = #tpu.dot_dimension_numbers<[1], [0], [0], [1], [0, 0, 1, 1], [], []>} : vector<32x32xbf16>, vector<32x32xbf16>, vector<32x32xf32> -> vector<32x32xf32>
    %32 = vector.shape_cast %31 : vector<32x32xf32> to vector<4x8x32xf32>
    %33 = vector.shape_cast %27 : vector<8x32xf32> to vector<1x8x32xf32>
    %34 = vector.broadcast %33 : vector<1x8x32xf32> to vector<4x8x32xf32>
    %35 = arith.addf %32, %34 : vector<4x8x32xf32>
    %cst_18 = arith.constant 0.000000e+00 : f32
    %36 = vector.broadcast %cst_18 : f32 to vector<4x8x32xf32>
    %37 = arith.maximumf %35, %36 : vector<4x8x32xf32>
    %c0_19 = arith.constant 0 : index
    %c0_20 = arith.constant 0 : index
    %38 = vector.load %arg10[%c0_19, %c0_20] : memref<1x32xf32, #tpu.memory_space<vmem>>, vector<1x32xf32>
    %39 = vector.shape_cast %38 : vector<1x32xf32> to vector<1x1x32xf32>
    %40 = vector.broadcast %39 : vector<1x1x32xf32> to vector<4x8x32xf32>
    %41 = arith.mulf %37, %40 : vector<4x8x32xf32>
    %cst_21 = arith.constant dense<0.000000e+00> : vector<4x8xf32>
    %42 = vector.multi_reduction <add>, %41, %cst_21 [2] : vector<4x8x32xf32> to vector<4x8xf32>
    %43 = vector.broadcast %8 : vector<1x8x32xf32> to vector<4x8x32xf32>
    %44 = arith.mulf %7, %43 : vector<4x8x32xf32>
    %cst_22 = arith.constant dense<0.000000e+00> : vector<4x8xf32>
    %45 = vector.multi_reduction <add>, %44, %cst_22 [2] : vector<4x8x32xf32> to vector<4x8xf32>
    %46 = arith.mulf %7, %7 : vector<4x8x32xf32>
    %cst_23 = arith.constant dense<0.000000e+00> : vector<4x8xf32>
    %47 = vector.multi_reduction <add>, %46, %cst_23 [2] : vector<4x8x32xf32> to vector<4x8xf32>
    %48 = math.sqrt %47 : vector<4x8xf32>
    %49 = vector.broadcast %11 : vector<1x8xf32> to vector<4x8xf32>
    %50 = arith.mulf %49, %48 : vector<4x8xf32>
    %cst_24 = arith.constant 9.99999997E-7 : f32
    %51 = vector.broadcast %cst_24 : f32 to vector<4x8xf32>
    %52 = arith.maximumf %50, %51 : vector<4x8xf32>
    %53 = tpu.reciprocal %52 {approx = true} : vector<4x8xf32> -> vector<4x8xf32>
    %54 = arith.mulf %45, %53 : vector<4x8xf32>
    %55 = vector.shape_cast %22 : vector<8x32xf32> to vector<1x8x32xf32>
    %56 = vector.broadcast %55 : vector<1x8x32xf32> to vector<4x8x32xf32>
    %57 = arith.mulf %7, %56 : vector<4x8x32xf32>
    %cst_25 = arith.constant dense<0.000000e+00> : vector<4x8xf32>
    %58 = vector.multi_reduction <add>, %57, %cst_25 [2] : vector<4x8x32xf32> to vector<4x8xf32>
    %c0_26 = arith.constant 0 : index
    %c0_27 = arith.constant 0 : index
    %59 = vector.load %arg8[%c0_26, %c0_27] : memref<1x32xf32, #tpu.memory_space<vmem>>, vector<1x32xf32>
    %60 = vector.shape_cast %59 : vector<1x32xf32> to vector<1x1x32xf32>
    %61 = vector.broadcast %60 : vector<1x1x32xf32> to vector<4x8x32xf32>
    %62 = arith.mulf %7, %61 : vector<4x8x32xf32>
    %cst_28 = arith.constant dense<0.000000e+00> : vector<4x8xf32>
    %63 = vector.multi_reduction <add>, %62, %cst_28 [2] : vector<4x8x32xf32> to vector<4x8xf32>
    %64 = arith.subf %58, %63 : vector<4x8xf32>
    %65 = arith.addf %64, %42 : vector<4x8xf32>
    %66 = vector.broadcast %0 : f32 to vector<4x8xf32>
    %67 = arith.mulf %54, %66 : vector<4x8xf32>
    %68 = arith.addf %65, %67 : vector<4x8xf32>
    %69 = vector.broadcast %19 : vector<1x8xf32> to vector<4x8xf32>
    %70 = arith.addf %68, %69 : vector<4x8xf32>
    %c0_29 = arith.constant 0 : index
    %c0_30 = arith.constant 0 : index
    %71 = vector.load %arg11[%c0_29, %c0_30] : memref<4x8xf32, #tpu.memory_space<vmem>>, vector<4x8xf32>
    tpu.vector_store %arg11[%c0_29, %c0_30], %70 {strides = array<i32>} : memref<4x8xf32, #tpu.memory_space<vmem>>, vector<4x8xf32>,
    return
  }
  func.func @transform_0(%arg0: i32) -> i32 {
    %c0_i32 = arith.constant 0 : i32
    %c0_i32_0 = arith.constant 0 : i32
    return %c0_i32 : i32
  }
  func.func @transform_1(%arg0: i32) -> (i32, i32) {
    %c0_i32 = arith.constant 0 : i32
    %c0_i32_0 = arith.constant 0 : i32
    return %arg0, %c0_i32 : i32, i32
  }
  func.func @transform_2(%arg0: i32) -> (i32, i32, i32) {
    %c0_i32 = arith.constant 0 : i32
    %c0_i32_0 = arith.constant 0 : i32
    %c0_i32_1 = arith.constant 0 : i32
    return %c0_i32, %arg0, %c0_i32_0 : i32, i32, i32
  }
  func.func @transform_3(%arg0: i32) -> (i32, i32) {
    %c0_i32 = arith.constant 0 : i32
    %c0_i32_0 = arith.constant 0 : i32
    %c0_i32_1 = arith.constant 0 : i32
    return %c0_i32, %c0_i32_0 : i32, i32
  }
  func.func @transform_4(%arg0: i32) -> (i32, i32) {
    %c0_i32 = arith.constant 0 : i32
    %c0_i32_0 = arith.constant 0 : i32
    %c0_i32_1 = arith.constant 0 : i32
    return %c0_i32, %c0_i32_0 : i32, i32
  }
  func.func @transform_5(%arg0: i32) -> (i32, i32) {
    %c0_i32 = arith.constant 0 : i32
    %c0_i32_0 = arith.constant 0 : i32
    %c0_i32_1 = arith.constant 0 : i32
    return %c0_i32, %c0_i32_0 : i32, i32
  }
  func.func @transform_6(%arg0: i32) -> (i32, i32) {
    %c0_i32 = arith.constant 0 : i32
    %c0_i32_0 = arith.constant 0 : i32
    %c0_i32_1 = arith.constant 0 : i32
    return %c0_i32, %c0_i32_0 : i32, i32
  }
  func.func @transform_7(%arg0: i32) -> (i32, i32) {
    %c0_i32 = arith.constant 0 : i32
    %c0_i32_0 = arith.constant 0 : i32
    %c0_i32_1 = arith.constant 0 : i32
    return %c0_i32, %c0_i32_0 : i32, i32
  }
  func.func @transform_8(%arg0: i32) -> (i32, i32) {
    %c0_i32 = arith.constant 0 : i32
    %c0_i32_0 = arith.constant 0 : i32
    %c0_i32_1 = arith.constant 0 : i32
    return %c0_i32, %c0_i32_0 : i32, i32
  }
  func.func @transform_9(%arg0: i32) -> (i32, i32) {
    %c0_i32 = arith.constant 0 : i32
    %c0_i32_0 = arith.constant 0 : i32
    %c0_i32_1 = arith.constant 0 : i32
    return %c0_i32, %c0_i32_0 : i32, i32
  }
  func.func @transform_10(%arg0: i32) -> (i32, i32) {
    %c0_i32 = arith.constant 0 : i32
    %c0_i32_0 = arith.constant 0 : i32
    return %c0_i32, %arg0 : i32, i32
  }
}

</mosaic_0001>

<bundles_post_ra>
// kernel: tpu_custom_call.1
= control target key start
LH: loop header
LB: loop body
LE: loop exit
PB: predicated region body
PF: predicated region fallthrough
CT: control target
= control target key end

     0   :  { %15 = vsyncpa [#allocation5], 0  ;;  %s915_s0 = inlined_call_operand.hbm [shape: f32[2], index: 0, kind: input, shape index: {}]   ;;  %s916_s1 = inlined_call_operand.hbm [shape: bf16[8,96], index: 1, kind: input, shape index: {}]   ;;  %s917_s2 = inlined_call_operand.hbm [shape: bf16[4,8,32], index: 2, kind: input, shape index: {}]   ;;  %s918_s3 = inlined_call_operand.hbm [shape: bf16[32,32], index: 3, kind: input, shape index: {}]   ;;  %s919_s4 = inlined_call_operand.hbm [shape: bf16[32,32], index: 4, kind: input, shape index: {}]   ;;  %s920_s5 = inlined_call_operand.vmem [shape: f32[1,32], index: 5, kind: input, shape index: {}]   ;;  %s921_s6 = inlined_call_operand.vmem [shape: f32[1,32], index: 6, kind: input, shape index: {}]   ;;  %s922_s7 = inlined_call_operand.vmem [shape: f32[1,32], index: 7, kind: input, shape index: {}]   ;;  %s923_s8 = inlined_call_operand.vmem [shape: f32[1,96], index: 8, kind: input, shape index: {}]   ;;  %s924_s9 = inlined_call_operand.vmem [shape: f32[1,32], index: 9, kind: input, shape index: {}]   ;;  %s925_s10 = inlined_call_operand.hbm [shape: f32[4,8], index: 10, kind: output, shape index: {}]  }
   0x1   :  { %16 = vsyncpa [#allocation3], 0 }
   0x2   :  { %17 = vsyncpa [#allocation8], 0 }
   0x3   :  { %18 = vsyncpa [#allocation11], 0 }
   0x4   :  { %19 = vsyncpa [#allocation4], 0  ;;  %s706_s13 = smov [#allocation7]   ;;  %s576_s17 = scalar_lea.hbm %s917_s2, 256 }
   0x5   :  { %s43_s14 = sshll.u32 %s706_s13, 4  ;;  %p577_p0 = scmp.ne.s32.totalorder %s917_s2, %s576_s17  ;;  %s44_s14 = int_to_ptr.vmem [resolvable:$true] %s43_s14 }
   0x6   :  { %p580_p1 = scmp.lt.u32.totalorder %s576_s17, %s917_s2 }
   0x8   :  { %p582_p2 = pnand %p580_p1, %p577_p0 }
   0xa   :  { %585 = shalt.err (!%p582_p2)
}
   0xb   :  { %s586_s22 = scalar_lea.vmem %s44_s14, 256  ;;  %p591_p4 = scmp.lt.s32.totalorder %s44_s14, %s44_s14 }
   0xc   :  { %p587_p3 = scmp.ne.s32.totalorder %s44_s14, %s586_s22  ;;  %p592_p5 = scmp.lt.s32.totalorder %s586_s22, %s586_s22 }
   0xe   :  { %p593_p6 = por %p592_p5, %p591_p4 }
  0x10   :  { %p594_p7 = pnand %p593_p6, %p587_p3 }
  0x12   :  { %597 = shalt.err (!%p594_p7)
}
  0x13   :  { %s707_s23 = smov 64   ;;  %s708_s24 = smov 4  }
  0x14   :  { %49 = dma.hbm_to_vmem [thread:$0]  %s917_s2, 256, %s44_s14, [#allocation8], %s707_s23, %s707_s23, %s708_s24  }
  0x15   :  { %s598_s29 = scalar_lea.hbm %s915_s0, 16 }
  0x16   :  { %p599_p8 = scmp.ne.s32.totalorder %s915_s0, %s598_s29  ;;  %p602_p9 = scmp.lt.u32.totalorder %s598_s29, %s915_s0 }
  0x18   :  { %p604_p10 = pnand %p602_p9, %p599_p8 }
  0x1a   :  { %607 = shalt.err (!%p604_p10)
}
  0x1b   :  { %s709_s15 = smov [#allocation2]   ;;  %s710_s2 = smov [#allocation6]  }
  0x1c   :  { %27 = dma.hbm_to_smem %s915_s0, 16, %s709_s15, [#allocation5]  }
  0x1d   :  { %s34_s14 = sshll.u32 %s710_s2, 4  ;;  %s711_s18 = smov [#allocation9]   ;;  %s35_s14 = int_to_ptr.vmem [resolvable:$true] %s34_s14 }
  0x1e   :  { %s55_s19 = sshll.u32 %s711_s18, 4  ;;  %s608_s22 = scalar_lea.hbm %s916_s1, 64  ;;  %s798_s19 = int_to_ptr.vmem [resolvable:$true] %s55_s19 }
  0x1f   :  { %p609_p11 = scmp.ne.s32.totalorder %s916_s1, %s608_s22  ;;  %p612_p12 = scmp.lt.u32.totalorder %s608_s22, %s916_s1 }
  0x21   :  { %p614_p13 = pnand %p612_p12, %p609_p11 }
  0x23   :  { %617 = shalt.err (!%p614_p13)
}
  0x24   :  { %s618_s0 = scalar_lea.vmem %s35_s14, 64  ;;  %p623_p1 = scmp.lt.s32.totalorder %s35_s14, %s35_s14 }
  0x25   :  { %p619_p0 = scmp.ne.s32.totalorder %s35_s14, %s618_s0  ;;  %p624_p2 = scmp.lt.s32.totalorder %s618_s0, %s618_s0 }
  0x27   :  { %p625_p3 = por %p624_p2, %p623_p1 }
  0x29   :  { %p626_p4 = pnand %p625_p3, %p619_p0 }
  0x2b   :  { %629 = shalt.err (!%p626_p4)
}
  0x2c   :  { %37 = dma.hbm_to_vmem [thread:$0]  %s916_s1, 64, %s35_s14, [#allocation3]  }
  0x2d   :  { %s630_s13 = scalar_lea.hbm %s918_s3, 256 }
  0x2e   :  { %p631_p5 = scmp.ne.s32.totalorder %s918_s3, %s630_s13  ;;  %p634_p6 = scmp.lt.u32.totalorder %s630_s13, %s918_s3 }
  0x30   :  { %p636_p7 = pnand %p634_p6, %p631_p5 }
  0x32   :  { %639 = shalt.err (!%p636_p7)
}
  0x33   :  { %s640_s18 = scalar_lea.vmem %s798_s19, 256  ;;  %p645_p9 = scmp.lt.s32.totalorder %s798_s19, %s798_s19 }
  0x34   :  { %p641_p8 = scmp.ne.s32.totalorder %s798_s19, %s640_s18  ;;  %p646_p10 = scmp.lt.s32.totalorder %s640_s18, %s640_s18 }
  0x36   :  { %p647_p11 = por %p646_p10, %p645_p9 }
  0x38   :  { %p648_p12 = pnand %p647_p11, %p641_p8 }
  0x3a   :  { %651 = shalt.err (!%p648_p12)
}
  0x3b   :  { %61 = dma.hbm_to_vmem [thread:$0]  %s918_s3, 256, %s798_s19, [#allocation8], %s707_s23, %s707_s23, %s708_s24  }
  0x3c   :  { %s712_s20 = smov [#allocation10]   ;;  %s652_s26 = scalar_lea.hbm %s919_s4, 256 }
  0x3d   :  { %s67_s21 = sshll.u32 %s712_s20, 4  ;;  %p653_p13 = scmp.ne.s32.totalorder %s919_s4, %s652_s26  ;;  %s68_s21 = int_to_ptr.vmem [resolvable:$true] %s67_s21 }
  0x3e   :  { %p656_p0 = scmp.lt.u32.totalorder %s652_s26, %s919_s4 }
  0x40   :  { %p658_p1 = pnand %p656_p0, %p653_p13 }
  0x42   :  { %661 = shalt.err (!%p658_p1)
}
  0x43   :  { %s662_s30 = scalar_lea.vmem %s68_s21, 256  ;;  %p667_p3 = scmp.lt.s32.totalorder %s68_s21, %s68_s21 }
  0x44   :  { %p663_p2 = scmp.ne.s32.totalorder %s68_s21, %s662_s30  ;;  %p668_p4 = scmp.lt.s32.totalorder %s662_s30, %s662_s30 }
  0x46   :  { %p669_p5 = por %p668_p4, %p667_p3 }
  0x48   :  { %p670_p6 = pnand %p669_p5, %p663_p2 }
  0x4a   :  { %673 = shalt.err (!%p670_p6)
}
  0x4b   :  { %73 = dma.hbm_to_vmem [thread:$0]  %s919_s4, 256, %s68_s21, [#allocation11], %s707_s23, %s707_s23, %s708_s24  }
  0x4c   :  { %696 = dma.done.wait [#allocation5], 16  }
  0x4d   :  { %697 = vsyncadd [#allocation5], 4294967280 }
  0x4e   :  { %698 = dma.done.wait [#allocation3], 64  }
  0x4f   :  { %699 = vsyncadd [#allocation3], 4294967232 }
  0x50   :  { %700 = dma.done.wait [#allocation8], 512  }
  0x51   :  { %701 = vsyncadd [#allocation8], 4294966784 }
  0x52   :  { %702 = dma.done.wait [#allocation11], 256  }
  0x53   :  { %703 = vsyncadd [#allocation11], 4294967040 }
  0x54   :  { %99 = sfence }
  0x55   :  { %v550_v0 = vld [vmem:[#allocation9] sm:$0xff]   ;;  %v713_v1 = vmov 0.0   ;;  %v551_v2 = vld [vmem:[#allocation10] sm:$0xff]   ;;  %v552_v3 = vld [vmem:[#allocation9 + $0x8] sm:$0xff]   ;;  %vm714_vm0 = vmmov 0   ;;  %vm114_vm1 = vcmask 261120  }
  0x56   :  { %524 = vmatprep.subr.bf16.mxu0 %v713_v1  ;;  %528 = vmatprep.mubr.msk.bf16.mxu0 %vm714_vm0, %v713_v1  ;;  %v553_v4 = vld [vmem:[#allocation10 + $0x8] sm:$0xff]   ;;  %v103_v5 = vld [vmem:[#allocation6] sm:$0xf]  ;;  %v105_v6 = vld [vmem:[#allocation7] sm:$0xff]   ;;  %vm133_vm2 = vcmask 785408   ;;  %vm475_vm13 = vcmask 1041409  }
  0x57   :  { %525 = vmatpush3.bf16.msra.mxu0 %v550_v0  ;;  %532 = vmatprep.subr.bf16.mxu1 %v551_v2  ;;  %v107_v7 = vld [vmem:[#allocation7 + $0x8] sm:$0xff]   ;;  %v847_v8 = vunpack.c.l.bf16 %v103_v5  ;;  %v109_v9 = vunpack.c.l.bf16 %v105_v6  ;;  %v110_v10 = vunpack.c.h.bf16 %v105_v6  ;;  %v504_v19 = vld [vmem:[%s921_s6] ss:$0 sm:$0xff]  ;;  %vm477_vm14 = vcmask 1042434  }
  0x58   :  { %526 = vmatprep.subr.bf16.mxu0 %v713_v1  ;;  %533 = vmatpush3.bf16.msra.mxu1 %v551_v2  ;;  %v111_v11 = vunpack.c.l.bf16 %v107_v7  ;;  %v112_v12 = vunpack.c.h.bf16 %v107_v7  ;;  %v516_v29 = vld [vmem:[%s922_s7] ss:$0 sm:$0xff]  ;;  %vm479_vm15 = vcmask 1043459   ;;  %vm482_vm0 = vcmask 60416  }
  0x59   :  { %534 = vmatprep.subr.bf16.mxu1 %v553_v4  ;;  %536 = vmatprep.mubr.msk.bf16.mxu1 %vm114_vm1, %v105_v6  ;;  %v113_v13 = vmul.f32 %v847_v8, %v847_v8  ;;  %v333_v14 = vmul.f32 %v109_v9, %v109_v9  ;;  %v334_v15 = vmul.f32 %v110_v10, %v110_v10  ;;  %v505_v50 = vld [vmem:[%s920_s5] ss:$0 sm:$0xff]  ;;  %s101_s5 = sld [smem:[#allocation2]] }
  0x5a   :  { %v335_v16 = vmul.f32 %v111_v11, %v111_v11  ;;  %v336_v22 = vmul.f32 %v112_v12, %v112_v12  ;;  %v317_v23 = vmul.f32 %v109_v9, %v847_v8  ;;  %v146_v24 = vmul.f32 %v504_v19, %v847_v8  ;;  %v515_v61 = vld [vmem:[%s924_s9] ss:$0 sm:$0xff]  ;;  %s715_s9 = smov [#allocation12]  }
  0x5b   :  { %527 = vmatpush3.bf16.msra.mxu0 %v552_v3  ;;  %v115_v17 = vsel %vm114_vm1, %v113_v13, 0.0  ;;  %v340_v18 = vsel %vm114_vm1, %v334_v15, 0.0  ;;  %v337_v20 = vsel %vm114_vm1, %v333_v14, 0.0  ;;  %v318_v26 = vmul.f32 %v110_v10, %v847_v8  ;;  %v503_v1 = vld [vmem:[%s923_s8] ss:$0 sm:$0xff]  ;;  %s502_s8 = sld [smem:[#allocation2 + $0x1]] }
  0x5c   :  { %535 = vmatpush3.bf16.msra.mxu1 %v553_v4  ;;  %116 = vadd.xlane.f32.xlu0 %v115_v17  ;;  %v343_v21 = vsel %vm114_vm1, %v335_v16, 0.0  ;;  %v346_v25 = vsel %vm114_vm1, %v336_v22, 0.0  ;;  %v321_v27 = vsel %vm114_vm1, %v317_v23, 0.0  ;;  %v393_v28 = vmul.f32 %v146_v24, %v109_v9  ;;  %s490_s17 = sshll.u32 %s715_s9, 4  ;;  %s491_s17 = int_to_ptr.vmem [resolvable:$true] %s490_s17 }
  0x5d   :  { %341 = vadd.xlane.f32.xlu1 %v340_v18  ;;  %v324_v30 = vsel %vm114_vm1, %v318_v26, 0.0  ;;  %v394_v31 = vmul.f32 %v146_v24, %v110_v10  ;;  %v416_v33 = vmul.f32 %v516_v29, %v109_v9  ;;  %v417_v35 = vmul.f32 %v516_v29, %v110_v10  ;;  %s674_s2 = scalar_lea.vmem %s491_s17, 64  ;;  %p679_p8 = scmp.lt.s32.totalorder %s491_s17, %s491_s17 }
  0x5e   :  { %529 = vmatmul.mubr.msk.bf16.vlgmr.msra.gmra.mrb[0].mxu0 %vm114_vm1, %v103_v5  ;;  %v397_v32 = vsel %vm114_vm1, %v393_v28, 0.0  ;;  %v319_v37 = vmul.f32 %v111_v11, %v847_v8  ;;  %v395_v39 = vmul.f32 %v146_v24, %v111_v11  ;;  %v320_v42 = vmul.f32 %v112_v12, %v847_v8  ;;  %p675_p7 = scmp.ne.s32.totalorder %s491_s17, %s674_s2  ;;  %p680_p9 = scmp.lt.s32.totalorder %s674_s2, %s674_s2 }
  0x5f   :  { %537 = vmatmul.mubr.msk.bf16.vlgmr.msra.gmra.mrb[0].mxu1 %vm114_vm1, %v107_v7  ;;  %v400_v34 = vsel %vm114_vm1, %v394_v31, 0.0  ;;  %v420_v36 = vsel %vm114_vm1, %v416_v33, 0.0  ;;  %v423_v38 = vsel %vm114_vm1, %v417_v35, 0.0  ;;  %v418_v44 = vmul.f32 %v516_v29, %v111_v11 }
  0x60   :  { %338 = vadd.xlane.f32.xlu0 %v337_v20  ;;  %v327_v40 = vsel %vm114_vm1, %v319_v37, 0.0  ;;  %v403_v41 = vsel %vm114_vm1, %v395_v39, 0.0  ;;  %v330_v43 = vsel %vm114_vm1, %v320_v42, 0.0  ;;  %v396_v46 = vmul.f32 %v146_v24, %v112_v12  ;;  %p681_p10 = por %p680_p9, %p679_p8 }
  0x61   :  { %344 = vadd.xlane.f32.xlu1 %v343_v21  ;;  %v426_v45 = vsel %vm114_vm1, %v418_v44, 0.0  ;;  %v419_v47 = vmul.f32 %v516_v29, %v112_v12  ;;  %v132_v7 = vmul.f32 %v503_v1, %v847_v8 }
  0x62   :  { %v406_v48 = vsel %vm114_vm1, %v396_v46, 0.0  ;;  %p682_p11 = pnand %p681_p10, %p675_p7 }
  0x63   :  { %v429_v49 = vsel %vm114_vm1, %v419_v47, 0.0  ;;  %v134_v13 = vsel %vm133_vm2, %v132_v7, 0.0 }
  0x64   :  { %347 = vadd.xlane.f32.xlu0 %v346_v25 }
  0x65   :  { %322 = vadd.xlane.f32.xlu1 %v321_v27 }
  0x68   :  { %325 = vadd.xlane.f32.xlu0 %v324_v30 }
  0x69   :  { %398 = vadd.xlane.f32.xlu1 %v397_v32 }
  0x6c   :  { %401 = vadd.xlane.f32.xlu0 %v400_v34 }
  0x6d   :  { %421 = vadd.xlane.f32.xlu1 %v420_v36 }
  0x70   :  { %424 = vadd.xlane.f32.xlu0 %v423_v38 }
  0x71   :  { %328 = vadd.xlane.f32.xlu1 %v327_v40 }
  0x74   :  { %404 = vadd.xlane.f32.xlu0 %v403_v41 }
  0x75   :  { %427 = vadd.xlane.f32.xlu1 %v426_v45 }
  0x78   :  { %331 = vadd.xlane.f32.xlu0 %v330_v43 }
  0x79   :  { %407 = vadd.xlane.f32.xlu1 %v406_v48 }
  0x7c   :  { %430 = vadd.xlane.f32.xlu0 %v429_v49 }
  0xe9   :  { %v117_v17 = vpop.xlane.xlu0 %116 }
  0xea   :  { %v342_v8 = vpop.xlane.xlu1 %341  ;;  %558 = vrsqrt.f32 %v117_v17  ;;  %vm120_vm3 = vcmp.eq.f32.partialorder %v117_v17, inf  ;;  %vm122_vm6 = vcmp.eq.f32.partialorder %v117_v17, 0.0  ;;  %v123_v32 = vand.u32 2147483648, %v117_v17 }
  0xeb   :  { %vm358_vm5 = vcmp.eq.f32.partialorder %v342_v8, inf  ;;  %v361_v37 = vand.u32 2147483648, %v342_v8  ;;  %vm360_vm9 = vcmp.eq.f32.partialorder %v342_v8, 0.0 }
  0xed   :  { %v339_v18 = vpop.xlane.xlu0 %338 }
  0xee   :  { %v345_v19 = vpop.xlane.xlu1 %344  ;;  %560 = vrsqrt.f32 %v339_v18  ;;  %vm351_vm4 = vcmp.eq.f32.partialorder %v339_v18, inf  ;;  %v354_v33 = vand.u32 2147483648, %v339_v18  ;;  %vm353_vm8 = vcmp.eq.f32.partialorder %v339_v18, 0.0 }
  0xef   :  { %562 = vrsqrt.f32 %v342_v8  ;;  %vm365_vm7 = vcmp.eq.f32.partialorder %v345_v19, inf  ;;  %v368_v40 = vand.u32 2147483648, %v345_v19  ;;  %vm367_vm10 = vcmp.eq.f32.partialorder %v345_v19, 0.0 }
  0xf0   :  { %564 = vrsqrt.f32 %v345_v19 }
  0xf1   :  { %v348_v20 = vpop.xlane.xlu0 %347 }
  0xf2   :  { %566 = vrsqrt.f32 %v348_v20  ;;  %v896_v23 = vpop.xlane.xlu1 %322  ;;  %vm372_vm11 = vcmp.eq.f32.partialorder %v348_v20, inf  ;;  %v375_v45 = vand.u32 2147483648, %v348_v20  ;;  %vm374_vm12 = vcmp.eq.f32.partialorder %v348_v20, 0.0 }
  0xf4   :  { %v559_v21 = vpop.eup %558 }
  0xf5   :  { %v898_v25 = vpop.xlane.xlu0 %325  ;;  %v119_v27 = vmul.f32 %v559_v21, %v117_v17 }
  0xf6   :  { %v399_v34 = vpop.xlane.xlu1 %398 }
  0xf7   :  { %v121_v35 = vsel %vm120_vm3, %v117_v17, %v119_v27 }
  0xf8   :  { %v561_v22 = vpop.eup %560  ;;  %v124_v43 = vsel %vm122_vm6, %v123_v32, %v121_v35 }
  0xf9   :  { %v563_v24 = vpop.eup %562  ;;  %v350_v28 = vmul.f32 %v561_v22, %v339_v18  ;;  %v402_v38 = vpop.xlane.xlu0 %401 }
  0xfa   :  { %v565_v26 = vpop.eup %564  ;;  %v357_v29 = vmul.f32 %v563_v24, %v342_v8  ;;  %v422_v48 = vpop.xlane.xlu1 %421 }
  0xfb   :  { %v364_v31 = vmul.f32 %v565_v26, %v345_v19  ;;  %v352_v36 = vsel %vm351_vm4, %v339_v18, %v350_v28  ;;  %v432_v7 = vsub.f32 %v399_v34, %v422_v48 }
  0xfc   :  { %v567_v30 = vpop.eup %566  ;;  %v359_v39 = vsel %vm358_vm5, %v342_v8, %v357_v29  ;;  %v355_v44 = vsel %vm353_vm8, %v354_v33, %v352_v36  ;;  %v137_v8 = vstv %s502_s8 }
  0xfd   :  { %v371_v41 = vmul.f32 %v567_v30, %v348_v20  ;;  %v366_v42 = vsel %vm365_vm7, %v345_v19, %v364_v31  ;;  %v362_v46 = vsel %vm360_vm9, %v361_v37, %v359_v39 }
  0xfe   :  { %v369_v49 = vsel %vm367_vm10, %v368_v40, %v366_v42 }
  0xff   :  { %v373_v47 = vsel %vm372_vm11, %v348_v20, %v371_v41 }
 0x131   :  { %v207_v51 = vpop.f32.mrb[0].mxu0 }
 0x132   :  { %v208_v52 = vadd.f32 %v505_v50, %v207_v51  ;;  %v530_v53 = vpop.f32.mrb[1].mxu0  ;;  %v538_v54 = vpop.f32.mrb[0].mxu1  ;;  %v377_v50 = vmul.f32 %v355_v44, %v124_v43 }
 0x133   :  { %v210_v55 = vpop.f32.mrb[2].mxu0  ;;  %v271_v57 = vpop.f32.mrb[1].mxu1  ;;  %v379_v53 = vmul.f32 %v369_v49, %v124_v43 }
 0x134   :  { %v288_v56 = vadd.f32 %v538_v54, %v208_v52  ;;  %v531_v58 = vpop.f32.mrb[3].mxu0  ;;  %v286_v59 = vadd.f32 %v271_v57, %v208_v52  ;;  %v539_v60 = vpop.f32.mrb[2].mxu1  ;;  %v376_v54 = vsel %vm374_vm12, %v375_v45, %v373_v47  ;;  %v381_v55 = vmax.f32 %v377_v50, 1e-06 }
 0x135   :  { %v289_v63 = vadd.f32 %v539_v60, %v208_v52  ;;  %v274_v0 = vpop.f32.mrb[3].mxu1  ;;  %v425_v51 = vpop.xlane.xlu0 %424  ;;  %v380_v58 = vmul.f32 %v376_v54, %v124_v43  ;;  %v383_v60 = vmax.f32 %v379_v53, 1e-06 }
 0x136   :  { %v292_v62 = vmax.f32 %v288_v56, 0.0  ;;  %v290_v2 = vmax.f32 %v286_v59, 0.0  ;;  %v287_v3 = vadd.f32 %v274_v0, %v208_v52  ;;  %v378_v52 = vmul.f32 %v362_v46, %v124_v43  ;;  %v329_v57 = vpop.xlane.xlu1 %328 }
 0x137   :  { %v293_v9 = vmax.f32 %v289_v63, 0.0  ;;  %568 = vrcp.f32 %v381_v55  ;;  %v433_v17 = vsub.f32 %v402_v38, %v425_v51 }
 0x138   :  { %v303_v4 = vmul.f32 %v515_v61, %v292_v62  ;;  %v291_v5 = vmax.f32 %v287_v3, 0.0  ;;  %v301_v6 = vmul.f32 %v515_v61, %v290_v2  ;;  %v382_v56 = vmax.f32 %v378_v52, 1e-06 }
 0x139   :  { %v304_v15 = vmul.f32 %v515_v61, %v293_v9  ;;  %v405_v59 = vpop.xlane.xlu0 %404 }
 0x13a   :  { %v311_v10 = vsel %vm114_vm1, %v303_v4, 0.0  ;;  %v305_v11 = vsel %vm114_vm1, %v301_v6, 0.0  ;;  %v302_v12 = vmul.f32 %v515_v61, %v291_v5  ;;  %570 = vrcp.f32 %v382_v56  ;;  %v428_v62 = vpop.xlane.xlu1 %427 }
 0x13b   :  { %312 = vadd.xlane.f32.xlu1 %v311_v10  ;;  %306 = vadd.xlane.f32.xlu0 %v305_v11  ;;  %v314_v16 = vsel %vm114_vm1, %v304_v15, 0.0  ;;  %v384_v61 = vmax.f32 %v380_v58, 1e-06  ;;  %572 = vrcp.f32 %v383_v60  ;;  %v457_v5 = vlaneseq }
 0x13c   :  { %v308_v14 = vsel %vm114_vm1, %v302_v12, 0.0  ;;  %v440_v11 = vstv %s101_s5  ;;  %v434_v15 = vsub.f32 %v405_v59, %v428_v62 }
 0x13d   :  { %v332_v63 = vpop.xlane.xlu0 %331  ;;  %574 = vrcp.f32 %v384_v61  ;;  %v458_v18 = vand.u32 127, %v457_v5  ;;  %v460_v19 = vshrl.u32 %v457_v5, 7 }
 0x13e   :  { %v408_v0 = vpop.xlane.xlu1 %407 }
 0x13f   :  { %309 = vadd.xlane.f32.xlu1 %v308_v14  ;;  %135 = vadd.xlane.f32.xlu0 %v134_v13  ;;  %v461_v32 = vsub.s32 %v458_v18, %v460_v19 }
 0x141   :  { %v431_v1 = vpop.xlane.xlu0 %430  ;;  %v569_v2 = vpop.eup %568 }
 0x142   :  { %v389_v6 = vmul.f32 %v569_v2, %v896_v23  ;;  %v435_v30 = vsub.f32 %v408_v0, %v431_v1 }
 0x143   :  { %315 = vadd.xlane.f32.xlu1 %v314_v16 }
 0x144   :  { %v571_v3 = vpop.eup %570  ;;  %v441_v20 = vmul.f32 %v440_v11, %v389_v6 }
 0x145   :  { %v573_v4 = vpop.eup %572  ;;  %v390_v10 = vmul.f32 %v571_v3, %v898_v25 }
 0x146   :  { %v391_v14 = vmul.f32 %v573_v4, %v329_v57 }
 0x147   :  { %v575_v13 = vpop.eup %574  ;;  %v442_v24 = vmul.f32 %v440_v11, %v390_v10 }
 0x148   :  { %v392_v26 = vmul.f32 %v575_v13, %v332_v63  ;;  %v443_v28 = vmul.f32 %v440_v11, %v391_v14 }
 0x14a   :  { %v444_v36 = vmul.f32 %v440_v11, %v392_v26 }
 0x1c8   :  { %v313_v9 = vpop.xlane.xlu1 %312  ;;  %v307_v12 = vpop.xlane.xlu0 %306 }
 0x1c9   :  { %v436_v16 = vadd.f32 %v432_v7, %v307_v12  ;;  %v438_v21 = vadd.f32 %v434_v15, %v313_v9 }
 0x1cb   :  { %v445_v29 = vadd.f32 %v441_v20, %v436_v16  ;;  %v447_v33 = vadd.f32 %v443_v28, %v438_v21 }
 0x1cc   :  { %v310_v22 = vpop.xlane.xlu1 %309  ;;  %v136_v27 = vpop.xlane.xlu0 %135 }
 0x1cd   :  { %v437_v23 = vadd.f32 %v433_v17, %v310_v22  ;;  %v138_v25 = vadd.f32 %v137_v8, %v136_v27 }
 0x1cf   :  { %v446_v31 = vadd.f32 %v442_v24, %v437_v23  ;;  %v449_v34 = vadd.f32 %v445_v29, %v138_v25  ;;  %v451_v39 = vadd.f32 %v447_v33, %v138_v25 }
 0x1d0   :  { %v316_v35 = vpop.xlane.xlu1 %315 }
 0x1d1   :  { %v450_v37 = vadd.f32 %v446_v31, %v138_v25  ;;  %v439_v38 = vadd.f32 %v435_v30, %v316_v35  ;;  %v462_v41 = vrot.slane %v449_v34, %v461_v32  ;;  %v470_v45 = vrot.slane %v451_v39, %v461_v32 }
 0x1d3   :  { %v448_v40 = vadd.f32 %v444_v36, %v439_v38  ;;  %v466_v42 = vrot.slane %v450_v37, %v461_v32 }
 0x1d5   :  { %v452_v43 = vadd.f32 %v448_v40, %v138_v25  ;;  %v476_v44 = vsel %vm475_vm13, %v466_v42, %v462_v41 }
 0x1d6   :  { %v478_v47 = vsel %vm477_vm14, %v470_v45, %v476_v44 }
 0x1d7   :  { %v474_v46 = vrot.slane %v452_v43, %v461_v32 }
 0x1d9   :  { %v480_v48 = vsel %vm479_vm15, %v474_v46, %v478_v47 }
 0x1da   :  { %483 = vst.msk [vmem:[#allocation12] sm:$0xf] %vm482_vm0, %v480_v48 }
 0x1db   :  { %685 = shalt.err (!%p682_p11)
}
 0x1dc   :  { %s686_s14 = scalar_lea.hbm %s925_s10, 64 }
 0x1dd   :  { %p687_p12 = scmp.ne.s32.totalorder %s925_s10, %s686_s14  ;;  %p690_p13 = scmp.lt.u32.totalorder %s686_s14, %s925_s10 }
 0x1df   :  { %p692_p0 = pnand %p690_p13, %p687_p12 }
 0x1e1   :  { %695 = shalt.err (!%p692_p0)
}
 0x1e2   :  { %493 = dma.vmem_to_hbm [thread:$0]  %s491_s17, 64, %s925_s10, [#allocation4]  }
 0x1e3   :  { %704 = dma.done.wait [#allocation4], 64  }
 0x1e4   :  { %705 = vsyncadd [#allocation4], 4294967232 }
 0x1e5   :  { %497 = vsyncpa [#allocation3], 1 }
 0x1e6   :  { %498 = vsyncpa [#allocation8], 1 }
 0x1e7   :  { %499 = vsyncpa [#allocation11], 1 }
 0x1e8   :  { %500 = vsyncpa [#allocation4], 1 }
 0x1e9   :  { %501 = vsyncpa [#allocation5], 1 }

</bundles_post_ra>
